<compile_context>
chip_gen: v5e
topology: v5e:2x2
jax: 0.10.0
libtpu: 0.0.40
codegen_flags: <defaults>
</compile_context>

<pallas_src>
import math

import jax
import jax.numpy as jnp
from jax import lax
from jax.experimental import pallas as pl
from jax.experimental.pallas import tpu as pltpu


def _round_up(x, m):
    return ((x + m - 1) // m) * m


def _pick_tile(n_pad128, cap):
    """Largest power-of-two multiple of 128 that is <= min(cap, n_pad128)."""
    t = 128
    while t * 2 <= min(cap, n_pad128):
        t *= 2
    return t


# ---------------------------------------------------------------------------
# Kernel 1: support = x.T @ w   (computed once; no in-kernel transpose)
# ---------------------------------------------------------------------------
def _support_kernel(x_ref, w_ref, s_ref):
    # x_ref: (in_f, tile_k)   w_ref: (in_f, F_pad)   s_ref: (tile_k, F_pad)
    s = lax.dot_general(
        x_ref[...], w_ref[...],
        dimension_numbers=(((0,), (0,)), ((), ())),  # contract in_f vs in_f
        preferred_element_type=jnp.float32,
    )
    s_ref[...] = s.astype(s_ref.dtype)


# ---------------------------------------------------------------------------
# Kernel 2: out = adj @ support + bias   (K-tiled, resident f32 accumulator)
# ---------------------------------------------------------------------------
def _adj_spmm_kernel(adj_ref, s_ref, b_ref, out_ref, acc_ref):
    # adj_ref: (tile_n, tile_k)   s_ref: (tile_k, F_pad)   b_ref: (1, F_pad)
    # out_ref: (tile_n, F_pad)    acc_ref: (tile_n, F_pad) f32 scratch
    k = pl.program_id(1)

    @pl.when(k == 0)
    def _():
        acc_ref[...] = jnp.zeros_like(acc_ref)

    acc_ref[...] += jnp.dot(adj_ref[...], s_ref[...],
                            preferred_element_type=jnp.float32)

    @pl.when(k == pl.num_programs(1) - 1)
    def _():
        # bias add kept in f32 (v5e VPU has no bf16 path)
        out_ref[...] = (acc_ref[...] + b_ref[...]).astype(out_ref.dtype)


# ---------------------------------------------------------------------------
# Wrapper
# ---------------------------------------------------------------------------
def graph_convolution(x, adj, weight, bias=None, *,
                      tile_n=256, tile_k=512, matmul_dtype=jnp.float32):
    """x: (in_features, N), adj: (N, N) dense, weight: (in_features, out_features),
    bias: (out_features,) or None.  Returns (N, out_features) float32."""
    in_f, n = x.shape
    out_f = weight.shape[1]
    assert weight.shape[0] == in_f
    assert adj.shape == (n, n)

    # Lane-dense padded output width (multiple of 128 lanes).
    f_pad = _round_up(out_f, 128)

    # Tile sizes (powers of two * 128, so the smaller always divides the larger).
    n128 = _round_up(n, 128)
    tn = _pick_tile(n128, tile_n)
    tk = _pick_tile(n128, tile_k)
    n_pad = _round_up(n, max(tn, tk))

    f32 = jnp.float32
    x_p = jnp.zeros((in_f, n_pad), f32).at[:, :n].set(x.astype(f32))
    adj_p = jnp.zeros((n_pad, n_pad), matmul_dtype).at[:n, :n].set(adj.astype(matmul_dtype))
    w_p = jnp.zeros((in_f, f_pad), f32).at[:, :out_f].set(weight.astype(f32))
    if bias is None:
        b_p = jnp.zeros((1, f_pad), f32)
    else:
        b_p = jnp.zeros((1, f_pad), f32).at[0, :out_f].set(bias.astype(f32))

    # ---- Kernel 1: support = x.T @ w, computed once over the node axis ----
    support = pl.pallas_call(
        _support_kernel,
        out_shape=jax.ShapeDtypeStruct((n_pad, f_pad), matmul_dtype),
        grid_spec=pltpu.PrefetchScalarGridSpec(
            num_scalar_prefetch=0,
            grid=(n_pad // tk,),
            in_specs=[
                pl.BlockSpec((in_f, tk), lambda i: (0, i)),       # x chunk
                pl.BlockSpec((in_f, f_pad), lambda i: (0, 0)),    # weight (resident)
            ],
            out_specs=pl.BlockSpec((tk, f_pad), lambda i: (i, 0)),
        ),
        compiler_params=pltpu.CompilerParams(
            dimension_semantics=("parallel",),
        ),
    )(x_p, w_p)

    # ---- Kernel 2: out = adj @ support + bias (row tiles parallel, K reduction last) ----
    out_p = pl.pallas_call(
        _adj_spmm_kernel,
        out_shape=jax.ShapeDtypeStruct((n_pad, f_pad), f32),
        grid_spec=pltpu.PrefetchScalarGridSpec(
            num_scalar_prefetch=0,
            grid=(n_pad // tn, n_pad // tk),
            in_specs=[
                pl.BlockSpec((tn, tk), lambda i, k: (i, k)),      # adj tile (streamed)
                pl.BlockSpec((tk, f_pad), lambda i, k: (k, 0)),   # support K-chunk
                pl.BlockSpec((1, f_pad), lambda i, k: (0, 0)),    # bias (resident)
            ],
            out_specs=pl.BlockSpec((tn, f_pad), lambda i, k: (i, 0)),
            scratch_shapes=[pltpu.VMEM((tn, f_pad), jnp.float32)],
        ),
        compiler_params=pltpu.CompilerParams(
            dimension_semantics=("parallel", "arbitrary"),
        ),
    )(adj_p, support, b_p)

    return out_p[:n, :out_f]


if __name__ == "__main__":
    # Small shapes consistent with the module's forward.
    in_features = 32
    out_features = 16
    n_nodes = 128  # number of graph nodes

    key = jax.random.PRNGKey(0)
    kx, kadj, kw, kb = jax.random.split(key, 4)

    # Deterministic parameter init matching reset_parameters():
    # uniform(-stdv, stdv) with stdv = 1 / sqrt(out_features)
    stdv = 1.0 / math.sqrt(out_features)
    weight = jax.random.uniform(kw, (in_features, out_features),
                                minval=-stdv, maxval=stdv, dtype=jnp.float32)
    bias = jax.random.uniform(kb, (out_features,),
                              minval=-stdv, maxval=stdv, dtype=jnp.float32)

    # Inputs: feature-major node features and a row-normalized dense adjacency.
    x = jax.random.normal(kx, (in_features, n_nodes), dtype=jnp.float32)
    adj_raw = (jax.random.uniform(kadj, (n_nodes, n_nodes)) < 0.1).astype(jnp.float32)
    adj = adj_raw + jnp.eye(n_nodes, dtype=jnp.float32)
    adj = adj / jnp.sum(adj, axis=1, keepdims=True)

    # f32 path: matches the exact torch semantics.
    out = jax.block_until_ready(graph_convolution(x, adj, weight, bias))
    ref = adj @ (x.T @ weight) + bias
    assert out.shape == (n_nodes, out_features)
    assert jnp.allclose(out, ref, atol=1e-4, rtol=1e-4), "mismatch vs reference (f32)"

    # bf16 adj/support path (halves the dominant N^2 adj HBM stream; f32 accumulation).
    out_bf16 = jax.block_until_ready(
        graph_convolution(x, adj, weight, bias, matmul_dtype=jnp.bfloat16))
    assert jnp.allclose(out_bf16, ref, atol=5e-2, rtol=5e-2), "mismatch vs reference (bf16)"

    print("KERNEL_OK")
</pallas_src>

<mosaic_0001>
module attributes {stable_mosaic.version = 11 : i64} {
  func.func @_support_kernel(%arg0: i32, %arg1: memref<32x128xf32, #tpu.memory_space<vmem>>, %arg2: memref<32x128xf32, #tpu.memory_space<vmem>>, %arg3: memref<128x128xf32, #tpu.memory_space<vmem>>) attributes {dimension_semantics = [#tpu.dimension_semantics<parallel>], iteration_bounds = array<i64: 1>, scalar_prefetch = 0 : i64, scratch_operands = 0 : i64, tpu.core_type = #tpu.core_type<tc>, window_params = [{transform_indices = @transform_0, window_bounds = array<i64: 32, 128>}, {pipeline_mode = #tpu.pipeline_mode<synchronous>, transform_indices = @transform_1, window_bounds = array<i64: 32, 128>}, {transform_indices = @transform_2, window_bounds = array<i64: 128, 128>}]} {
    %c0 = arith.constant 0 : index
    %c0_0 = arith.constant 0 : index
    %0 = vector.load %arg1[%c0, %c0_0] : memref<32x128xf32, #tpu.memory_space<vmem>>, vector<32x128xf32>
    %c0_1 = arith.constant 0 : index
    %c0_2 = arith.constant 0 : index
    %1 = vector.load %arg2[%c0_1, %c0_2] : memref<32x128xf32, #tpu.memory_space<vmem>>, vector<32x128xf32>
    %cst = arith.constant dense<0.000000e+00> : vector<128x128xf32>
    %2 = tpu.matmul %0, %1, %cst {dimension_numbers = #tpu.dot_dimension_numbers<[0], [0], [1], [1], [0, 1, 1, 1], [], []>} : vector<32x128xf32>, vector<32x128xf32>, vector<128x128xf32> -> vector<128x128xf32>
    %c0_3 = arith.constant 0 : index
    %c0_4 = arith.constant 0 : index
    %3 = vector.load %arg3[%c0_3, %c0_4] : memref<128x128xf32, #tpu.memory_space<vmem>>, vector<128x128xf32>
    tpu.vector_store %arg3[%c0_3, %c0_4], %2 {strides = array<i32>} : memref<128x128xf32, #tpu.memory_space<vmem>>, vector<128x128xf32>,
    return
  }
  func.func @transform_0(%arg0: i32) -> (i32, i32) {
    %c0_i32 = arith.constant 0 : i32
    %c0_i32_0 = arith.constant 0 : i32
    return %c0_i32, %arg0 : i32, i32
  }
  func.func @transform_1(%arg0: i32) -> (i32, i32) {
    %c0_i32 = arith.constant 0 : i32
    %c0_i32_0 = arith.constant 0 : i32
    %c0_i32_1 = arith.constant 0 : i32
    return %c0_i32, %c0_i32_0 : i32, i32
  }
  func.func @transform_2(%arg0: i32) -> (i32, i32) {
    %c0_i32 = arith.constant 0 : i32
    %c0_i32_0 = arith.constant 0 : i32
    return %arg0, %c0_i32 : i32, i32
  }
}

</mosaic_0001>

<bundles_post_ra>
// kernel: tpu_custom_call.1
= control target key start
LH: loop header
LB: loop body
LE: loop exit
PB: predicated region body
PF: predicated region fallthrough
CT: control target
= control target key end

     0   :  { %7 = vsyncpa [#allocation3], 0  ;;  %s400_s0 = inlined_call_operand.hbm [shape: f32[32,128], index: 0, kind: input, shape index: {}]   ;;  %s401_s1 = inlined_call_operand.hbm [shape: f32[32,128], index: 1, kind: input, shape index: {}]   ;;  %s402_s2 = inlined_call_operand.hbm [shape: f32[128,128], index: 2, kind: output, shape index: {}]  }
   0x1   :  { %8 = vsyncpa [#allocation6], 0 }
   0x2   :  { %9 = vsyncpa [#allocation4], 0  ;;  %s14_s11 = sshll.u32 %s400_s0, 4  ;;  %s346_s12 = smov [#allocation2]   ;;  %s15_s11 = int_to_ptr.hbm [resolvable:$true] %s14_s11 }
   0x3   :  { %s16_s13 = sshll.u32 %s346_s12, 4  ;;  %s27_s16 = sshll.u32 %s401_s1, 4  ;;  %s17_s13 = int_to_ptr.vmem [resolvable:$true] %s16_s13  ;;  %s28_s16 = int_to_ptr.hbm [resolvable:$true] %s27_s16 }
   0x4   :  { %s347_s17 = smov 128   ;;  %s348_s18 = smov 8  }
   0x5   :  { %22 = dma.hbm_to_vmem [thread:$0]  %s15_s11, 512, %s17_s13, [#allocation3], %s347_s17, %s347_s17, %s348_s18  }
   0x6   :  { %s349_s19 = smov [#allocation5]  }
   0x7   :  { %s29_s20 = sshll.u32 %s349_s19, 4  ;;  %s30_s20 = int_to_ptr.vmem [resolvable:$true] %s29_s20 }
   0x8   :  { %35 = dma.hbm_to_vmem [thread:$0]  %s28_s16, 512, %s30_s20, [#allocation6], %s347_s17, %s347_s17, %s348_s18  }
   0x9   :  { %340 = dma.done.wait [#allocation3], 512  }
   0xa   :  { %341 = vsyncadd [#allocation3], 4294966784 }
   0xb   :  { %342 = dma.done.wait [#allocation6], 512  }
   0xc   :  { %343 = vsyncadd [#allocation6], 4294966784  ;;  %v44_v0 = vld [vmem:[#allocation2] sm:$0xff]  ;;  %v51_v1 = vld [vmem:[#allocation5 + $0x18] sm:$0xff]  ;;  %vm84_vm0 = vcmask 261120   ;;  %s350_s0 = smov [#allocation7]  }
   0xd   :  { %52 = vxpose.xlu0.b32.start [1/4] (short) %v44_v0, 128  ;;  %v50_v2 = vld [vmem:[#allocation5 + $0x10] sm:$0xff]  ;;  %145 = vmatpush.msra.mxu0 %v51_v1  ;;  %v49_v3 = vld [vmem:[#allocation5 + $0x8] sm:$0xff]  ;;  %v48_v4 = vld [vmem:[#allocation5] sm:$0xff]  ;;  %s218_s1 = sshll.u32 %s350_s0, 4  ;;  %s220_s23 = sshll.u32 %s402_s2, 4  ;;  %s219_s1 = int_to_ptr.vmem [resolvable:$true] %s218_s1  ;;  %s221_s23 = int_to_ptr.hbm [resolvable:$true] %s220_s23 }
   0xe   :  { %250 = vmatpush.msra.mxu1 %v51_v1  ;;  %251 = vmatpush.msra.mxu2 %v51_v1  ;;  %v45_v5 = vld [vmem:[#allocation2 + $0x8] sm:$0xff]  ;;  %v46_v6 = vld [vmem:[#allocation2 + $0x10] sm:$0xff]  ;;  %v47_v7 = vld [vmem:[#allocation2 + $0x18] sm:$0xff] }
   0xf   :  { %252 = vmatpush.msra.mxu3 %v51_v1  ;;  %146 = vmatpush.msra.mxu0 %v50_v2 }
  0x10   :  { %253 = vmatpush.msra.mxu1 %v50_v2  ;;  %254 = vmatpush.msra.mxu2 %v50_v2 }
  0x11   :  { %255 = vmatpush.msra.mxu3 %v50_v2  ;;  %147 = vmatpush.msra.mxu0 %v49_v3 }
  0x12   :  { %256 = vmatpush.msra.mxu1 %v49_v3  ;;  %257 = vmatpush.msra.mxu2 %v49_v3 }
  0x13   :  { %258 = vmatpush.msra.mxu3 %v49_v3  ;;  %148 = vmatpush.msra.mxu0 %v48_v4 }
  0x14   :  { %259 = vmatpush.msra.mxu1 %v48_v4  ;;  %260 = vmatpush.msra.mxu2 %v48_v4 }
  0x15   :  { %53 = vxpose.xlu0.b32.cont [2/4] (short) %v45_v5, 128  ;;  %261 = vmatpush.msra.mxu3 %v48_v4 }
  0x1d   :  { %54 = vxpose.xlu0.b32.cont [3/4] (short) %v46_v6, 128 }
  0x25   :  { %55 = vxpose.xlu0.b32.end [4/4] (short) %v47_v7, 128 }
  0xb1   :  { %v68_v8 = vpop.trf.xlu0 }
  0xb2   :  { %234 = vmatmul.msk.f32.vlgmr.msra.gmra.mxu0 %vm84_vm0, %v68_v8 }
  0xb9   :  { %v69_v9 = vpop.trf.xlu0 }
  0xba   :  { %235 = vmatmul.msk.f32.gmra.mxu0 %vm84_vm0, %v69_v9 }
  0xc1   :  { %v70_v10 = vpop.trf.xlu0 }
  0xc2   :  { %236 = vmatmul.msk.f32.gmra.mxu0 %vm84_vm0, %v70_v10 }
  0xc9   :  { %v71_v11 = vpop.trf.xlu0 }
  0xca   :  { %237 = vmatmul.msk.f32.gmra.mxu0 %vm84_vm0, %v71_v11 }
  0xd1   :  { %v72_v12 = vpop.trf.xlu0 }
  0xd2   :  { %238 = vmatmul.msk.f32.vlgmr.msra.gmra.mxu1 %vm84_vm0, %v72_v12 }
  0xd9   :  { %v73_v13 = vpop.trf.xlu0 }
  0xda   :  { %239 = vmatmul.msk.f32.gmra.mxu1 %vm84_vm0, %v73_v13 }
  0xe1   :  { %v74_v14 = vpop.trf.xlu0 }
  0xe2   :  { %240 = vmatmul.msk.f32.gmra.mxu1 %vm84_vm0, %v74_v14 }
  0xe9   :  { %v75_v15 = vpop.trf.xlu0 }
  0xea   :  { %241 = vmatmul.msk.f32.gmra.mxu1 %vm84_vm0, %v75_v15 }
  0xf1   :  { %v76_v16 = vpop.trf.xlu0 }
  0xf2   :  { %242 = vmatmul.msk.f32.vlgmr.msra.gmra.mxu2 %vm84_vm0, %v76_v16 }
  0xf9   :  { %v77_v17 = vpop.trf.xlu0 }
  0xfa   :  { %243 = vmatmul.msk.f32.gmra.mxu2 %vm84_vm0, %v77_v17 }
 0x101   :  { %v78_v18 = vpop.trf.xlu0 }
 0x102   :  { %244 = vmatmul.msk.f32.gmra.mxu2 %vm84_vm0, %v78_v18 }
 0x109   :  { %v79_v19 = vpop.trf.xlu0 }
 0x10a   :  { %245 = vmatmul.msk.f32.gmra.mxu2 %vm84_vm0, %v79_v19 }
 0x111   :  { %v80_v20 = vpop.trf.xlu0 }
 0x112   :  { %246 = vmatmul.msk.f32.vlgmr.msra.gmra.mxu3 %vm84_vm0, %v80_v20 }
 0x119   :  { %v81_v21 = vpop.trf.xlu0 }
 0x11a   :  { %247 = vmatmul.msk.f32.gmra.mxu3 %vm84_vm0, %v81_v21 }
 0x121   :  { %v82_v22 = vpop.trf.xlu0 }
 0x122   :  { %248 = vmatmul.msk.f32.gmra.mxu3 %vm84_vm0, %v82_v22 }
 0x129   :  { %v83_v23 = vpop.trf.xlu0 }
 0x12a   :  { %249 = vmatmul.msk.f32.gmra.mxu3 %vm84_vm0, %v83_v23 }
 0x12f   :  { %v150_v24 = vpop.f32.mrf.mxu0 }
 0x130   :  { %198 = vst [vmem:[#allocation7] sm:$0xff] %v150_v24 }
 0x137   :  { %v153_v25 = vpop.f32.mrf.mxu0 }
 0x138   :  { %199 = vst [vmem:[#allocation7 + $0x8] sm:$0xff] %v153_v25 }
 0x13f   :  { %v156_v26 = vpop.f32.mrf.mxu0 }
 0x140   :  { %200 = vst [vmem:[#allocation7 + $0x10] sm:$0xff] %v156_v26 }
 0x147   :  { %v159_v27 = vpop.f32.mrf.mxu0 }
 0x148   :  { %201 = vst [vmem:[#allocation7 + $0x18] sm:$0xff] %v159_v27 }
 0x14f   :  { %v162_v28 = vpop.f32.mrf.mxu1 }
 0x150   :  { %202 = vst [vmem:[#allocation7 + $0x20] sm:$0xff] %v162_v28 }
 0x157   :  { %v165_v29 = vpop.f32.mrf.mxu1 }
 0x158   :  { %203 = vst [vmem:[#allocation7 + $0x28] sm:$0xff] %v165_v29 }
 0x15f   :  { %v168_v30 = vpop.f32.mrf.mxu1 }
 0x160   :  { %204 = vst [vmem:[#allocation7 + $0x30] sm:$0xff] %v168_v30 }
 0x167   :  { %v171_v31 = vpop.f32.mrf.mxu1 }
 0x168   :  { %205 = vst [vmem:[#allocation7 + $0x38] sm:$0xff] %v171_v31 }
 0x175   :  { %v174_v32 = vpop.f32.mrf.mxu2 }
 0x176   :  { %206 = vst [vmem:[#allocation7 + $0x40] sm:$0xff] %v174_v32 }
 0x17d   :  { %v177_v33 = vpop.f32.mrf.mxu2 }
 0x17e   :  { %207 = vst [vmem:[#allocation7 + $0x48] sm:$0xff] %v177_v33 }
 0x185   :  { %v180_v34 = vpop.f32.mrf.mxu2 }
 0x186   :  { %208 = vst [vmem:[#allocation7 + $0x50] sm:$0xff] %v180_v34 }
 0x18d   :  { %v183_v35 = vpop.f32.mrf.mxu2 }
 0x18e   :  { %209 = vst [vmem:[#allocation7 + $0x58] sm:$0xff] %v183_v35 }
 0x195   :  { %v186_v36 = vpop.f32.mrf.mxu3 }
 0x196   :  { %210 = vst [vmem:[#allocation7 + $0x60] sm:$0xff] %v186_v36 }
 0x19d   :  { %v189_v37 = vpop.f32.mrf.mxu3 }
 0x19e   :  { %211 = vst [vmem:[#allocation7 + $0x68] sm:$0xff] %v189_v37 }
 0x1a5   :  { %v192_v38 = vpop.f32.mrf.mxu3 }
 0x1a6   :  { %212 = vst [vmem:[#allocation7 + $0x70] sm:$0xff] %v192_v38 }
 0x1ad   :  { %v195_v39 = vpop.f32.mrf.mxu3 }
 0x1ae   :  { %213 = vst [vmem:[#allocation7 + $0x78] sm:$0xff] %v195_v39 }
 0x1af   :  { %226 = dma.vmem_to_hbm [thread:$0]  %s219_s1, 2048, %s221_s23, [#allocation4], %s347_s17, %s347_s17, %s348_s18  }
 0x1b0   :  { %344 = dma.done.wait [#allocation4], 2048  }
 0x1b1   :  { %345 = vsyncadd [#allocation4], 4294965248 }
 0x1b2   :  { %231 = vsyncpa [#allocation3], 1 }
 0x1b3   :  { %232 = vsyncpa [#allocation6], 1 }
 0x1b4   :  { %233 = vsyncpa [#allocation4], 1 }

</bundles_post_ra>
